<compile_context>
chip_gen: v5e
topology: v5e:2x2
jax: 0.10.0
libtpu: 0.0.40
codegen_flags: <defaults>
</compile_context>

<pallas_src>
import functools

import jax
import jax.numpy as jnp
from jax.experimental import pallas as pl
from jax.experimental.pallas import tpu as pltpu

_MAX_TILE_V = 2048  # fc weight tile width along the vocab (lane) axis


def _round_up(x, m):
    return (x + m - 1) // m * m


def _fc_tiling(output_dim):
    """Returns (V_pad, TILE_V) with V_pad a multiple of TILE_V (both 128-mult)."""
    v128 = _round_up(output_dim, 128)
    if v128 <= _MAX_TILE_V:
        return v128, v128
    return _round_up(output_dim, _MAX_TILE_V), _MAX_TILE_V


def decoder_step_kernel(emb_ref, h_prev_ref, w_ih_ref, w_hh_ref, b_rnn_ref,
                        w_fc_ref, b_fc_ref, pred_ref, h_out_ref, h_bf16_ref,
                        *, h_pad):
    # emb:    (B_pad, E_pad)  bf16   resident across all V tiles
    # h_prev: (B_pad, H_pad)  bf16   resident
    # w_ih:   (E_pad, H_pad)  bf16   = W_ih^T, zero padded, resident
    # w_hh:   (H_pad, H_pad)  bf16   = W_hh^T, zero padded, resident
    # b_rnn:  (1, H_pad)      f32    = b_ih + b_hh
    # w_fc:   (H_pad+E_pad, TILE_V) bf16  fc weight^T tile (hidden rows first)
    # b_fc:   (1, TILE_V)     f32
    # pred:   (B_pad, TILE_V) f32 out tile;  h_out: (B_pad, H_pad) f32 out
    # h_bf16: (B_pad, H_pad)  bf16 scratch carried across V tiles

    # Small RNN step: computed once, on the first vocab tile.
    @pl.when(pl.program_id(0) == 0)
    def _():
        pre = (jnp.dot(emb_ref[...], w_ih_ref[...],
                       preferred_element_type=jnp.float32)
               + jnp.dot(h_prev_ref[...], w_hh_ref[...],
                         preferred_element_type=jnp.float32)
               + b_rnn_ref[...])
        h_new = jnp.tanh(pre)                         # (B_pad, H_pad) f32
        h_out_ref[...] = h_new                        # recurrent state stays f32
        h_bf16_ref[...] = h_new.astype(jnp.bfloat16)  # MXU LHS for the fc dots

    # fc projection for this vocab tile: two MXU calls with f32 accumulation,
    # no (B, H+E) concat scratch round-trip on the tanh -> matmul critical path.
    pred_ref[...] = (
        jnp.dot(h_bf16_ref[...], w_fc_ref[:h_pad, :],
                preferred_element_type=jnp.float32)
        + jnp.dot(emb_ref[...], w_fc_ref[h_pad:, :],
                  preferred_element_type=jnp.float32)
        + b_fc_ref[...])


def decoder_forward(tokens, hidden_prev, params):
    """tokens: (B,) int32; hidden_prev: (1, B, H).

    Returns (prediction (B, 1, V), hidden (1, B, H)), matching Decoder.forward.
    """
    emb_table = params["embedding"]                   # (V, E) f32
    V, E = emb_table.shape
    B = tokens.shape[0]
    H = hidden_prev.shape[-1]

    E_pad, H_pad = params["w_ih_p"].shape
    V_pad = params["w_fc_p"].shape[1]
    _, tile_v = _fc_tiling(V)
    B_pad = max(16, _round_up(B, 16))                 # bf16: 16 sublanes / vreg

    # Wrapper glue: embedding gather + zero-padded bf16 MXU operands.
    # TODO(synk): fold gather + padding into the kernel (scalar-prefetched token
    #   ids + pl.Element row gather) when the multi-step decode loop is fused.
    emb = jnp.take(emb_table, tokens, axis=0)         # (B, E)
    emb_p = jnp.zeros((B_pad, E_pad), jnp.bfloat16).at[:B, :E].set(
        emb.astype(jnp.bfloat16))
    h_prev_p = jnp.zeros((B_pad, H_pad), jnp.bfloat16).at[:B, :H].set(
        hidden_prev[0].astype(jnp.bfloat16))

    num_v_tiles = V_pad // tile_v
    kernel = functools.partial(decoder_step_kernel, h_pad=H_pad)

    flops = (2 * B_pad * (E_pad + H_pad) * H_pad
             + 2 * B_pad * (H_pad + E_pad) * V_pad)
    bytes_accessed = (2 * (B_pad * (E_pad + H_pad) + E_pad * H_pad
                           + H_pad * H_pad + (H_pad + E_pad) * V_pad)
                      + 4 * (H_pad + V_pad + B_pad * V_pad + B_pad * H_pad))

    pred_p, h_p = pl.pallas_call(
        kernel,
        out_shape=(jax.ShapeDtypeStruct((B_pad, V_pad), jnp.float32),
                   jax.ShapeDtypeStruct((B_pad, H_pad), jnp.float32)),
        grid=(num_v_tiles,),
        in_specs=[
            pl.BlockSpec((B_pad, E_pad), lambda j: (0, 0)),           # emb
            pl.BlockSpec((B_pad, H_pad), lambda j: (0, 0)),           # h_prev
            pl.BlockSpec((E_pad, H_pad), lambda j: (0, 0)),           # W_ih^T
            pl.BlockSpec((H_pad, H_pad), lambda j: (0, 0)),           # W_hh^T
            pl.BlockSpec((1, H_pad), lambda j: (0, 0)),               # b_ih+b_hh
            pl.BlockSpec((H_pad + E_pad, tile_v), lambda j: (0, j)),  # fc W tile
            pl.BlockSpec((1, tile_v), lambda j: (0, j)),              # fc b tile
        ],
        out_specs=(
            pl.BlockSpec((B_pad, tile_v), lambda j: (0, j)),          # logits
            pl.BlockSpec((B_pad, H_pad), lambda j: (0, 0)),           # new hidden
        ),
        scratch_shapes=[pltpu.VMEM((B_pad, H_pad), jnp.bfloat16)],
        compiler_params=pltpu.CompilerParams(
            dimension_semantics=("arbitrary",)),
        cost_estimate=pl.CostEstimate(
            flops=flops,
            transcendentals=B_pad * H_pad,
            bytes_accessed=bytes_accessed),
    )(emb_p, h_prev_p, params["w_ih_p"], params["w_hh_p"], params["b_rnn_p"],
      params["w_fc_p"], params["b_fc_p"])

    prediction = pred_p[:B, :V][:, None, :]           # (B, 1, V)
    hidden = h_p[:B, :H][None, :, :]                  # (1, B, H)
    return prediction, hidden


def init_params(key, output_dim, emb_dim, hid_dim):
    """PyTorch-shaped init (nn.Embedding / nn.RNN / nn.Linear), pre-packed into
    padded bf16 weights for the kernel. Returns (packed_params, raw)."""
    ks = jax.random.split(key, 7)
    s_rnn = 1.0 / jnp.sqrt(hid_dim)
    s_fc = 1.0 / jnp.sqrt(hid_dim + emb_dim)

    embedding = jax.random.normal(ks[0], (output_dim, emb_dim), jnp.float32)
    w_ih = jax.random.uniform(ks[1], (hid_dim, emb_dim), jnp.float32, -s_rnn, s_rnn)
    w_hh = jax.random.uniform(ks[2], (hid_dim, hid_dim), jnp.float32, -s_rnn, s_rnn)
    b_ih = jax.random.uniform(ks[3], (hid_dim,), jnp.float32, -s_rnn, s_rnn)
    b_hh = jax.random.uniform(ks[4], (hid_dim,), jnp.float32, -s_rnn, s_rnn)
    w_fc = jax.random.uniform(ks[5], (output_dim, hid_dim + emb_dim), jnp.float32,
                              -s_fc, s_fc)
    b_fc = jax.random.uniform(ks[6], (output_dim,), jnp.float32, -s_fc, s_fc)

    E_pad = _round_up(emb_dim, 128)
    H_pad = _round_up(hid_dim, 128)
    V_pad, _ = _fc_tiling(output_dim)

    w_ih_p = jnp.zeros((E_pad, H_pad), jnp.float32).at[:emb_dim, :hid_dim].set(w_ih.T)
    w_hh_p = jnp.zeros((H_pad, H_pad), jnp.float32).at[:hid_dim, :hid_dim].set(w_hh.T)
    b_rnn_p = jnp.zeros((1, H_pad), jnp.float32).at[0, :hid_dim].set(b_ih + b_hh)

    # fc weight^T with hidden rows first then embedding rows, each zero-padded.
    w_fc_t = w_fc.T                                   # (H+E, V)
    w_fc_p = jnp.zeros((H_pad + E_pad, V_pad), jnp.float32)
    w_fc_p = w_fc_p.at[:hid_dim, :output_dim].set(w_fc_t[:hid_dim])
    w_fc_p = w_fc_p.at[H_pad:H_pad + emb_dim, :output_dim].set(w_fc_t[hid_dim:])
    b_fc_p = jnp.zeros((1, V_pad), jnp.float32).at[0, :output_dim].set(b_fc)

    # TODO(synk): int8 (v5e/v6e) / fp8 (v7x) quantization of w_fc_p to halve the
    #   dominant HBM stream; gate on pltpu.get_tpu_info().
    packed = {
        "embedding": embedding,
        "w_ih_p": w_ih_p.astype(jnp.bfloat16),
        "w_hh_p": w_hh_p.astype(jnp.bfloat16),
        "b_rnn_p": b_rnn_p,
        "w_fc_p": w_fc_p.astype(jnp.bfloat16),
        "b_fc_p": b_fc_p,
    }
    raw = {"embedding": embedding, "w_ih": w_ih, "w_hh": w_hh,
           "b_ih": b_ih, "b_hh": b_hh, "w_fc": w_fc, "b_fc": b_fc}
    return packed, raw


def reference_forward(tokens, hidden_prev, raw):
    """Pure-JAX f32 reference mirroring the PyTorch forward."""
    emb = raw["embedding"][tokens]                    # (B, E)
    h_prev = hidden_prev[0]                           # (B, H)
    pre = (emb @ raw["w_ih"].T + raw["b_ih"]
           + h_prev @ raw["w_hh"].T + raw["b_hh"])
    h_new = jnp.tanh(pre)
    pred = jnp.concatenate([h_new, emb], -1) @ raw["w_fc"].T + raw["b_fc"]
    return pred[:, None, :], h_new[None, :, :]


if __name__ == "__main__":
    # Small shapes consistent with the module defaults (scaled down).
    OUTPUT_DIM = 32   # vocab size
    EMB_DIM = 16
    HID_DIM = 32
    BATCH = 2

    key = jax.random.PRNGKey(0)
    kp, kt, kh = jax.random.split(key, 3)

    params, raw = init_params(kp, OUTPUT_DIM, EMB_DIM, HID_DIM)
    tokens = jax.random.randint(kt, (BATCH,), 0, OUTPUT_DIM, dtype=jnp.int32)
    hidden_prev = jax.random.normal(kh, (1, BATCH, HID_DIM), jnp.float32)

    prediction, hidden = jax.jit(decoder_forward)(tokens, hidden_prev, params)
    jax.block_until_ready((prediction, hidden))

    assert prediction.shape == (BATCH, 1, OUTPUT_DIM)
    assert hidden.shape == (1, BATCH, HID_DIM)

    # Correctness vs. f32 reference (bf16 MXU operands -> relaxed tolerance).
    ref_pred, ref_hidden = reference_forward(tokens, hidden_prev, raw)
    assert jnp.allclose(prediction, ref_pred, atol=5e-2, rtol=5e-2)
    assert jnp.allclose(hidden, ref_hidden, atol=5e-2, rtol=5e-2)

    print("KERNEL_OK")
</pallas_src>

<mosaic_0001>
module attributes {stable_mosaic.version = 11 : i64} {
  func.func @decoder_step_kernel(%arg0: i32, %arg1: memref<16x128xbf16, #tpu.memory_space<vmem>>, %arg2: memref<16x128xbf16, #tpu.memory_space<vmem>>, %arg3: memref<128x128xbf16, #tpu.memory_space<vmem>>, %arg4: memref<128x128xbf16, #tpu.memory_space<vmem>>, %arg5: memref<1x128xf32, #tpu.memory_space<vmem>>, %arg6: memref<256x128xbf16, #tpu.memory_space<vmem>>, %arg7: memref<1x128xf32, #tpu.memory_space<vmem>>, %arg8: memref<16x128xf32, #tpu.memory_space<vmem>>, %arg9: memref<16x128xf32, #tpu.memory_space<vmem>>, %arg10: memref<16x128xbf16, #tpu.memory_space<vmem>>) attributes {dimension_semantics = [#tpu.dimension_semantics<arbitrary>], iteration_bounds = array<i64: 1>, scalar_prefetch = 0 : i64, scratch_operands = 1 : i64, tpu.core_type = #tpu.core_type<tc>, window_params = [{pipeline_mode = #tpu.pipeline_mode<synchronous>, transform_indices = @transform_0, window_bounds = array<i64: 16, 128>}, {pipeline_mode = #tpu.pipeline_mode<synchronous>, transform_indices = @transform_1, window_bounds = array<i64: 16, 128>}, {pipeline_mode = #tpu.pipeline_mode<synchronous>, transform_indices = @transform_2, window_bounds = array<i64: 128, 128>}, {pipeline_mode = #tpu.pipeline_mode<synchronous>, transform_indices = @transform_3, window_bounds = array<i64: 128, 128>}, {pipeline_mode = #tpu.pipeline_mode<synchronous>, transform_indices = @transform_4, window_bounds = array<i64: 1, 128>}, {transform_indices = @transform_5, window_bounds = array<i64: 256, 128>}, {transform_indices = @transform_6, window_bounds = array<i64: 1, 128>}, {transform_indices = @transform_7, window_bounds = array<i64: 16, 128>}, {pipeline_mode = #tpu.pipeline_mode<synchronous>, transform_indices = @transform_8, window_bounds = array<i64: 16, 128>}]} {
    %c0_i32 = arith.constant 0 : i32
    %0 = arith.cmpi eq, %arg0, %c0_i32 : i32
    %1 = arith.extui %0 : i1 to i32
    %c0_i32_0 = arith.constant 0 : i32
    %2 = arith.cmpi ne, %1, %c0_i32_0 : i32
    scf.if %2 {
      %c0_12 = arith.constant 0 : index
      %c0_13 = arith.constant 0 : index
      %14 = vector.load %arg1[%c0_12, %c0_13] : memref<16x128xbf16, #tpu.memory_space<vmem>>, vector<16x128xbf16>
      %c0_14 = arith.constant 0 : index
      %c0_15 = arith.constant 0 : index
      %15 = vector.load %arg3[%c0_14, %c0_15] : memref<128x128xbf16, #tpu.memory_space<vmem>>, vector<128x128xbf16>
      %cst_16 = arith.constant dense<0.000000e+00> : vector<16x128xf32>
      %16 = tpu.matmul %14, %15, %cst_16 {dimension_numbers = #tpu.dot_dimension_numbers<[1], [0], [0], [1], [0, 0, 1, 1], [], []>} : vector<16x128xbf16>, vector<128x128xbf16>, vector<16x128xf32> -> vector<16x128xf32>
      %c0_17 = arith.constant 0 : index
      %c0_18 = arith.constant 0 : index
      %17 = vector.load %arg2[%c0_17, %c0_18] : memref<16x128xbf16, #tpu.memory_space<vmem>>, vector<16x128xbf16>
      %c0_19 = arith.constant 0 : index
      %c0_20 = arith.constant 0 : index
      %18 = vector.load %arg4[%c0_19, %c0_20] : memref<128x128xbf16, #tpu.memory_space<vmem>>, vector<128x128xbf16>
      %cst_21 = arith.constant dense<0.000000e+00> : vector<16x128xf32>
      %19 = tpu.matmul %17, %18, %cst_21 {dimension_numbers = #tpu.dot_dimension_numbers<[1], [0], [0], [1], [0, 0, 1, 1], [], []>} : vector<16x128xbf16>, vector<128x128xbf16>, vector<16x128xf32> -> vector<16x128xf32>
      %20 = arith.addf %16, %19 : vector<16x128xf32>
      %c0_22 = arith.constant 0 : index
      %c0_23 = arith.constant 0 : index
      %21 = vector.load %arg5[%c0_22, %c0_23] : memref<1x128xf32, #tpu.memory_space<vmem>>, vector<1x128xf32>
      %22 = vector.broadcast %21 : vector<1x128xf32> to vector<16x128xf32>
      %23 = arith.addf %20, %22 : vector<16x128xf32>
      %24 = math.tanh %23 : vector<16x128xf32>
      %c0_24 = arith.constant 0 : index
      %c0_25 = arith.constant 0 : index
      %25 = vector.load %arg9[%c0_24, %c0_25] : memref<16x128xf32, #tpu.memory_space<vmem>>, vector<16x128xf32>
      tpu.vector_store %arg9[%c0_24, %c0_25], %24 {strides = array<i32>} : memref<16x128xf32, #tpu.memory_space<vmem>>, vector<16x128xf32>,
      %26 = arith.truncf %24 : vector<16x128xf32> to vector<16x128xbf16>
      %c0_26 = arith.constant 0 : index
      %c0_27 = arith.constant 0 : index
      %27 = vector.load %arg10[%c0_26, %c0_27] : memref<16x128xbf16, #tpu.memory_space<vmem>>, vector<16x128xbf16>
      tpu.vector_store %arg10[%c0_26, %c0_27], %26 {strides = array<i32>} : memref<16x128xbf16, #tpu.memory_space<vmem>>, vector<16x128xbf16>,
    } else {
    }
    %c0 = arith.constant 0 : index
    %c0_1 = arith.constant 0 : index
    %3 = vector.load %arg10[%c0, %c0_1] : memref<16x128xbf16, #tpu.memory_space<vmem>>, vector<16x128xbf16>
    %c0_2 = arith.constant 0 : index
    %c0_3 = arith.constant 0 : index
    %4 = vector.load %arg6[%c0_2, %c0_3] : memref<256x128xbf16, #tpu.memory_space<vmem>>, vector<128x128xbf16>
    %cst = arith.constant dense<0.000000e+00> : vector<16x128xf32>
    %5 = tpu.matmul %3, %4, %cst {dimension_numbers = #tpu.dot_dimension_numbers<[1], [0], [0], [1], [0, 0, 1, 1], [], []>} : vector<16x128xbf16>, vector<128x128xbf16>, vector<16x128xf32> -> vector<16x128xf32>
    %c0_4 = arith.constant 0 : index
    %c0_5 = arith.constant 0 : index
    %6 = vector.load %arg1[%c0_4, %c0_5] : memref<16x128xbf16, #tpu.memory_space<vmem>>, vector<16x128xbf16>
    %c128 = arith.constant 128 : index
    %c0_6 = arith.constant 0 : index
    %7 = vector.load %arg6[%c128, %c0_6] : memref<256x128xbf16, #tpu.memory_space<vmem>>, vector<128x128xbf16>
    %cst_7 = arith.constant dense<0.000000e+00> : vector<16x128xf32>
    %8 = tpu.matmul %6, %7, %cst_7 {dimension_numbers = #tpu.dot_dimension_numbers<[1], [0], [0], [1], [0, 0, 1, 1], [], []>} : vector<16x128xbf16>, vector<128x128xbf16>, vector<16x128xf32> -> vector<16x128xf32>
    %9 = arith.addf %5, %8 : vector<16x128xf32>
    %c0_8 = arith.constant 0 : index
    %c0_9 = arith.constant 0 : index
    %10 = vector.load %arg7[%c0_8, %c0_9] : memref<1x128xf32, #tpu.memory_space<vmem>>, vector<1x128xf32>
    %11 = vector.broadcast %10 : vector<1x128xf32> to vector<16x128xf32>
    %12 = arith.addf %9, %11 : vector<16x128xf32>
    %c0_10 = arith.constant 0 : index
    %c0_11 = arith.constant 0 : index
    %13 = vector.load %arg8[%c0_10, %c0_11] : memref<16x128xf32, #tpu.memory_space<vmem>>, vector<16x128xf32>
    tpu.vector_store %arg8[%c0_10, %c0_11], %12 {strides = array<i32>} : memref<16x128xf32, #tpu.memory_space<vmem>>, vector<16x128xf32>,
    return
  }
  func.func @transform_0(%arg0: i32) -> (i32, i32) {
    %c0_i32 = arith.constant 0 : i32
    %c0_i32_0 = arith.constant 0 : i32
    %c0_i32_1 = arith.constant 0 : i32
    return %c0_i32, %c0_i32_0 : i32, i32
  }
  func.func @transform_1(%arg0: i32) -> (i32, i32) {
    %c0_i32 = arith.constant 0 : i32
    %c0_i32_0 = arith.constant 0 : i32
    %c0_i32_1 = arith.constant 0 : i32
    return %c0_i32, %c0_i32_0 : i32, i32
  }
  func.func @transform_2(%arg0: i32) -> (i32, i32) {
    %c0_i32 = arith.constant 0 : i32
    %c0_i32_0 = arith.constant 0 : i32
    %c0_i32_1 = arith.constant 0 : i32
    return %c0_i32, %c0_i32_0 : i32, i32
  }
  func.func @transform_3(%arg0: i32) -> (i32, i32) {
    %c0_i32 = arith.constant 0 : i32
    %c0_i32_0 = arith.constant 0 : i32
    %c0_i32_1 = arith.constant 0 : i32
    return %c0_i32, %c0_i32_0 : i32, i32
  }
  func.func @transform_4(%arg0: i32) -> (i32, i32) {
    %c0_i32 = arith.constant 0 : i32
    %c0_i32_0 = arith.constant 0 : i32
    %c0_i32_1 = arith.constant 0 : i32
    return %c0_i32, %c0_i32_0 : i32, i32
  }
  func.func @transform_5(%arg0: i32) -> (i32, i32) {
    %c0_i32 = arith.constant 0 : i32
    %c0_i32_0 = arith.constant 0 : i32
    return %c0_i32, %arg0 : i32, i32
  }
  func.func @transform_6(%arg0: i32) -> (i32, i32) {
    %c0_i32 = arith.constant 0 : i32
    %c0_i32_0 = arith.constant 0 : i32
    return %c0_i32, %arg0 : i32, i32
  }
  func.func @transform_7(%arg0: i32) -> (i32, i32) {
    %c0_i32 = arith.constant 0 : i32
    %c0_i32_0 = arith.constant 0 : i32
    return %c0_i32, %arg0 : i32, i32
  }
  func.func @transform_8(%arg0: i32) -> (i32, i32) {
    %c0_i32 = arith.constant 0 : i32
    %c0_i32_0 = arith.constant 0 : i32
    %c0_i32_1 = arith.constant 0 : i32
    return %c0_i32, %c0_i32_0 : i32, i32
  }
}

</mosaic_0001>

<bundles_post_ra>
// kernel: decoder_forward.1
= control target key start
LH: loop header
LB: loop body
LE: loop exit
PB: predicated region body
PF: predicated region fallthrough
CT: control target
= control target key end

     0   :  { %14 = vsyncpa [#allocation4], 0  ;;  %s793_s0 = inlined_call_operand.vmem [shape: bf16[16,128], index: 0, kind: input, shape index: {}]   ;;  %s794_s1 = inlined_call_operand.vmem [shape: bf16[16,128], index: 1, kind: input, shape index: {}]   ;;  %s795_s2 = inlined_call_operand.vmem [shape: bf16[128,128], index: 2, kind: input, shape index: {}]   ;;  %s796_s3 = inlined_call_operand.hbm [shape: bf16[128,128], index: 3, kind: input, shape index: {}]   ;;  %s797_s4 = inlined_call_operand.vmem [shape: f32[1,128], index: 4, kind: input, shape index: {}]   ;;  %s798_s5 = inlined_call_operand.hbm [shape: bf16[256,128], index: 5, kind: input, shape index: {}]   ;;  %s799_s6 = inlined_call_operand.vmem [shape: f32[1,128], index: 6, kind: input, shape index: {}]   ;;  %s800_s7 = inlined_call_operand.vmem [shape: f32[16,128], index: 7, kind: output, shape index: {0}]   ;;  %s801_s8 = inlined_call_operand.vmem [shape: f32[16,128], index: 8, kind: output, shape index: {1}]  }
   0x1   :  { %s26_s29 = sshll.u32 %s796_s3, 4  ;;  %s27_s29 = int_to_ptr.hbm [resolvable:$true] %s26_s29 }
   0x2   :  { %15 = vsyncpa [#allocation6], 0  ;;  %s687_s30 = smov [#allocation3]   ;;  %s41_s12 = sshll.u32 %s798_s5, 4  ;;  %s42_s12 = int_to_ptr.hbm [resolvable:$true] %s41_s12 }
   0x3   :  { %s28_s9 = sshll.u32 %s687_s30, 4  ;;  %s688_s13 = smov 64   ;;  %s29_s9 = int_to_ptr.vmem [resolvable:$true] %s28_s9 }
   0x4   :  { %s689_s14 = smov 4   ;;  %s690_s15 = smov [#allocation5]  }
   0x5   :  { %34 = dma.hbm_to_vmem [thread:$0]  %s27_s29, 1024, %s29_s9, [#allocation4], %s688_s13, %s688_s13, %s689_s14  }
   0x6   :  { %s43_s16 = sshll.u32 %s690_s15, 4  ;;  %s44_s16 = int_to_ptr.vmem [resolvable:$true] %s43_s16 }
   0x7   :  { %49 = dma.hbm_to_vmem [thread:$0]  %s42_s12, 2048, %s44_s16, [#allocation6], %s688_s13, %s688_s13, %s689_s14  }
   0x8   :  { %683 = dma.done.wait [#allocation4], 1024  }
   0x9   :  { %684 = vsyncadd [#allocation4], 4294966272 }
   0xa   :  { %685 = dma.done.wait [#allocation6], 2048  }
   0xb   :  { %686 = vsyncadd [#allocation6], 4294965248  ;;  %v601_v0 = vld [vmem:[#allocation3 + $0x38] sm:$0xff]  ;;  %v592_v1 = vld [vmem:[%s795_s2 + $0x38] sm:$0xff] }
   0xc   :  { %154 = vmatpush.bf16.msra.mxu0 %v601_v0  ;;  %222 = vmatpush.bf16.msra.mxu1 %v592_v1  ;;  %v600_v2 = vld [vmem:[#allocation3 + $0x30] sm:$0xff]  ;;  %v591_v3 = vld [vmem:[%s795_s2 + $0x30] sm:$0xff]  ;;  %v590_v5 = vld [vmem:[%s795_s2 + $0x28] sm:$0xff] }
   0xd   :  { %v599_v4 = vld [vmem:[#allocation3 + $0x28] sm:$0xff]  ;;  %v619_v6 = vld [vmem:[#allocation5 + $0x78] sm:$0xff]  ;;  %v618_v7 = vld [vmem:[#allocation5 + $0x70] sm:$0xff] }
   0xe   :  { %340 = vmatpush.bf16.msra.mxu2 %v619_v6  ;;  %v598_v8 = vld [vmem:[#allocation3 + $0x20] sm:$0xff]  ;;  %v589_v9 = vld [vmem:[%s795_s2 + $0x20] sm:$0xff]  ;;  %v588_v11 = vld [vmem:[%s795_s2 + $0x18] sm:$0xff] }
   0xf   :  { %v597_v10 = vld [vmem:[#allocation3 + $0x18] sm:$0xff]  ;;  %v596_v12 = vld [vmem:[#allocation3 + $0x10] sm:$0xff]  ;;  %v587_v13 = vld [vmem:[%s795_s2 + $0x10] sm:$0xff] }
  0x10   :  { %155 = vmatpush.bf16.msra.mxu0 %v600_v2  ;;  %223 = vmatpush.bf16.msra.mxu1 %v591_v3  ;;  %v595_v14 = vld [vmem:[#allocation3 + $0x8] sm:$0xff]  ;;  %v586_v15 = vld [vmem:[%s795_s2 + $0x8] sm:$0xff]  ;;  %v585_v17 = vld [vmem:[%s795_s2] sm:$0xff] }
  0x11   :  { %v594_v16 = vld [vmem:[#allocation3] sm:$0xff]  ;;  %v593_v18 = vld [vmem:[%s794_s1] sm:$0xff]  ;;  %v617_v20 = vld [vmem:[#allocation5 + $0x68] sm:$0xff] }
  0x12   :  { %341 = vmatpush.bf16.msra.mxu2 %v618_v7  ;;  %v584_v19 = vld [vmem:[%s793_s0] sm:$0xff]  ;;  %v616_v22 = vld [vmem:[#allocation5 + $0x60] sm:$0xff]  ;;  %v609_v23 = vld [vmem:[#allocation5 + $0x30] sm:$0xff] }
  0x13   :  { %v610_v21 = vld [vmem:[#allocation5 + $0x38] sm:$0xff]  ;;  %v608_v25 = vld [vmem:[#allocation5 + $0x28] sm:$0xff]  ;;  %v614_v26 = vld [vmem:[#allocation5 + $0x50] sm:$0xff] }
  0x14   :  { %156 = vmatpush.bf16.msra.mxu0 %v599_v4  ;;  %224 = vmatpush.bf16.msra.mxu1 %v590_v5  ;;  %v615_v24 = vld [vmem:[#allocation5 + $0x58] sm:$0xff]  ;;  %v607_v27 = vld [vmem:[#allocation5 + $0x20] sm:$0xff]  ;;  %v613_v28 = vld [vmem:[#allocation5 + $0x48] sm:$0xff] }
  0x15   :  { %408 = vmatpush.bf16.msra.mxu3 %v610_v21  ;;  %v606_v29 = vld [vmem:[#allocation5 + $0x18] sm:$0xff]  ;;  %v612_v30 = vld [vmem:[#allocation5 + $0x40] sm:$0xff]  ;;  %v605_v31 = vld [vmem:[#allocation5 + $0x10] sm:$0xff] }
  0x16   :  { %342 = vmatpush.bf16.msra.mxu2 %v617_v20  ;;  %v611_v32 = vld [vmem:[%s793_s0] sm:$0xff]  ;;  %v604_v33 = vld [vmem:[#allocation5 + $0x8] sm:$0xff]  ;;  %v603_v34 = vld [vmem:[#allocation5] sm:$0xff] }
  0x17   :  { %v629_v35 = vld [vmem:[%s797_s4] ss:$0 sm:$0xff] }
  0x18   :  { %157 = vmatpush.bf16.msra.mxu0 %v598_v8  ;;  %225 = vmatpush.bf16.msra.mxu1 %v589_v9  ;;  %v630_v49 = vld [vmem:[%s799_s6] ss:$0 sm:$0xff] }
  0x19   :  { %409 = vmatpush.bf16.msra.mxu3 %v609_v23 }
  0x1a   :  { %343 = vmatpush.bf16.msra.mxu2 %v616_v22 }
  0x1c   :  { %158 = vmatpush.bf16.msra.mxu0 %v597_v10  ;;  %226 = vmatpush.bf16.msra.mxu1 %v588_v11 }
  0x1d   :  { %410 = vmatpush.bf16.msra.mxu3 %v608_v25 }
  0x1e   :  { %344 = vmatpush.bf16.msra.mxu2 %v615_v24 }
  0x20   :  { %159 = vmatpush.bf16.msra.mxu0 %v596_v12  ;;  %227 = vmatpush.bf16.msra.mxu1 %v587_v13 }
  0x21   :  { %411 = vmatpush.bf16.msra.mxu3 %v607_v27 }
  0x22   :  { %345 = vmatpush.bf16.msra.mxu2 %v614_v26 }
  0x24   :  { %160 = vmatpush.bf16.msra.mxu0 %v595_v14  ;;  %228 = vmatpush.bf16.msra.mxu1 %v586_v15 }
  0x25   :  { %412 = vmatpush.bf16.msra.mxu3 %v606_v29 }
  0x26   :  { %346 = vmatpush.bf16.msra.mxu2 %v613_v28 }
  0x28   :  { %161 = vmatpush.bf16.msra.mxu0 %v594_v16  ;;  %229 = vmatpush.bf16.msra.mxu1 %v585_v17 }
  0x29   :  { %413 = vmatpush.bf16.msra.mxu3 %v605_v31 }
  0x2a   :  { %347 = vmatpush.bf16.msra.mxu2 %v612_v30 }
  0x2b   :  { %162 = vmatmul.bf16.vlgmr.msra.gmra.mxu0 %v593_v18  ;;  %230 = vmatmul.bf16.vlgmr.msra.gmra.mxu1 %v584_v19 }
  0x2d   :  { %348 = vmatmul.bf16.vlgmr.msra.gmra.mxu2 %v611_v32  ;;  %414 = vmatpush.bf16.msra.mxu3 %v604_v33 }
  0x31   :  { %415 = vmatpush.bf16.msra.mxu3 %v603_v34 }
  0xa8   :  { %v163_v36 = vpop.f32.mrf.mxu0  ;;  %v231_v37 = vpop.f32.mrf.mxu1 }
  0xa9   :  { %v232_v38 = vadd.f32 %v231_v37, %v163_v36 }
  0xab   :  { %v240_v39 = vadd.f32 %v629_v35, %v232_v38 }
  0xad   :  { %631 = vtanh.f32 %v240_v39 }
  0xb0   :  { %v165_v40 = vpop.f32.mrf.mxu0  ;;  %v233_v41 = vpop.f32.mrf.mxu1 }
  0xb1   :  { %v234_v42 = vadd.f32 %v233_v41, %v165_v40  ;;  %v349_v48 = vpop.f32.mrf.mxu2 }
  0xb3   :  { %v632_v43 = vpop.eup %631  ;;  %v241_v44 = vadd.f32 %v629_v35, %v234_v42 }
  0xb4   :  { %244 = vst [vmem:[%s801_s8] sm:$0xff] %v632_v43 }
  0xb5   :  { %633 = vtanh.f32 %v241_v44 }
  0xb9   :  { %v351_v53 = vpop.f32.mrf.mxu2 }
  0xbb   :  { %v634_v45 = vpop.eup %633 }
  0xbc   :  { %245 = vst [vmem:[%s801_s8 + $0x8] sm:$0xff] %v634_v45  ;;  %v623_v46 = vpack.c.bf16 %v634_v45, %v632_v43 }
  0xbe   :  { %624 = vst [vmem:[#allocation2] sm:$0xff] %v623_v46  }
  0xc5   :  { %v602_v47 = vld [vmem:[#allocation2] sm:$0xff] }
  0xc6   :  { %416 = vmatmul.bf16.vlgmr.msra.gmra.mxu3 %v602_v47 }
 0x149   :  { %v417_v50 = vpop.f32.mrf.mxu3 }
 0x14a   :  { %v418_v51 = vadd.f32 %v417_v50, %v349_v48 }
 0x14c   :  { %v426_v52 = vadd.f32 %v630_v49, %v418_v51 }
 0x14e   :  { %428 = vst [vmem:[%s800_s7] sm:$0xff] %v426_v52 }
 0x151   :  { %v419_v54 = vpop.f32.mrf.mxu3 }
 0x152   :  { %v420_v55 = vadd.f32 %v419_v54, %v351_v53 }
 0x154   :  { %v427_v56 = vadd.f32 %v630_v49, %v420_v55 }
 0x156   :  { %429 = vst [vmem:[%s800_s7 + $0x8] sm:$0xff] %v427_v56 }
 0x157   :  { %438 = vsyncpa [#allocation4], 1 }
 0x158   :  { %439 = vsyncpa [#allocation6], 1 }

</bundles_post_ra>
